<compile_context>
chip_gen: v5e
topology: v5e:2x2
jax: 0.10.0
libtpu: 0.0.40
codegen_flags: <defaults>
</compile_context>

<pallas_src>
import functools
import math

import jax
import jax.numpy as jnp
from jax.experimental import pallas as pl
from jax.experimental.pallas import tpu as pltpu


def _pad(n, m):
    return ((n + m - 1) // m) * m


def _pick_tile(dim, pref, align):
    """Largest divisor of `dim` that is a multiple of `align` and <= `pref`.

    Falls back to the full dimension (always legal for Mosaic) when `dim` is small
    or has no aligned divisor.
    """
    if dim <= pref:
        return dim
    t = (pref // align) * align
    while t >= align:
        if dim % t == 0:
            return t
        t -= align
    # TODO(synk): pad + mask ragged dims instead of using the full extent.
    return dim


# ------------------------------ tiled linear -------------------------------- #

def _linear_kernel(x_ref, w_ref, b_ref, o_ref, acc_ref):
    """One (m, n, k) tile of  out = x @ w + b  with an f32 VMEM accumulator."""
    k = pl.program_id(2)

    @pl.when(k == 0)
    def _init():
        acc_ref[...] = jnp.zeros_like(acc_ref)

    # Operands stay in their input dtype; MXU accumulates in f32.
    acc_ref[...] += jnp.dot(x_ref[...], w_ref[...],
                            preferred_element_type=jnp.float32)

    @pl.when(k == pl.num_programs(2) - 1)
    def _store():
        o_ref[...] = (acc_ref[...] + b_ref[...].astype(jnp.float32)).astype(o_ref.dtype)


def linear(x2d, w, b, *, tm=512, tn=512, tk=256):
    """x2d: (M, K), w: (K, N), b: (N,)  ->  (M, N) = x2d @ w + b."""
    M, K = x2d.shape
    _, N = w.shape
    tm = _pick_tile(M, tm, 8)
    tn = _pick_tile(N, tn, 128)
    tk = _pick_tile(K, tk, 128)
    grid = (M // tm, N // tn, K // tk)

    itemsize = x2d.dtype.itemsize
    # Double-buffered x/w/b/out blocks + the f32 accumulator, with 2x margin.
    est = 2 * (tm * tk + tk * tn + 8 * _pad(tn, 128) + tm * tn) * itemsize + tm * tn * 4
    vmem_limit = int(max(2 * est, 32 << 20))

    return pl.pallas_call(
        _linear_kernel,
        out_shape=jax.ShapeDtypeStruct((M, N), x2d.dtype),
        grid_spec=pltpu.PrefetchScalarGridSpec(
            num_scalar_prefetch=0,
            grid=grid,
            in_specs=[
                pl.BlockSpec((tm, tk), lambda m, n, k: (m, k)),
                pl.BlockSpec((tk, tn), lambda m, n, k: (k, n)),
                pl.BlockSpec((1, tn), lambda m, n, k: (0, n)),
            ],
            out_specs=pl.BlockSpec((tm, tn), lambda m, n, k: (m, n)),
            scratch_shapes=[pltpu.VMEM((tm, tn), jnp.float32)],
        ),
        compiler_params=pltpu.CompilerParams(
            dimension_semantics=("parallel", "parallel", "arbitrary"),
            vmem_limit_bytes=vmem_limit),
    )(x2d, w, b.reshape(1, N))


# ------------------------- flash causal attention --------------------------- #

def _flash_attn_kernel(qi_map_ref, ki_map_ref, q_ref, k_ref, v_ref, o_ref,
                       m_ref, l_ref, acc_ref, *, n_head, scale):
    step = pl.program_id(1)
    qi = qi_map_ref[step]
    ki = ki_map_ref[step]

    tq, C = q_ref.shape          # (bt, C) -- leading batch dim is squeezed away
    tk = k_ref.shape[0]
    D = C // n_head

    @pl.when(ki == 0)
    def _init():
        m_ref[...] = jnp.full_like(m_ref, -jnp.inf)
        l_ref[...] = jnp.zeros_like(l_ref)
        acc_ref[...] = jnp.zeros_like(acc_ref)

    def _update(apply_mask):
        if apply_mask:
            # Only the diagonal block (ki == qi, tq == tk) needs a mask; local
            # iotas suffice because the q/k offsets coincide there.
            row = jax.lax.broadcasted_iota(jnp.int32, (tq, tk), 0)
            col = jax.lax.broadcasted_iota(jnp.int32, (tq, tk), 1)
            causal = col <= row

        for h in range(n_head):              # static unroll over heads
            lo = h * D
            # Static *Ref* lane-slices: only the (t, D) operands are materialized,
            # never the full (t, C) block -> much lower vreg pressure.
            qh = q_ref[:, lo:lo + D] * scale  # fold 1/sqrt(D) into the small operand
            kh = k_ref[:, lo:lo + D]
            vh = v_ref[:, lo:lo + D]

            # s = qh @ kh^T: contract the last dims, no transpose emitted.
            s = jax.lax.dot_general(
                qh, kh, dimension_numbers=(((1,), (1,)), ((), ())),
                preferred_element_type=jnp.float32)           # (tq, tk) f32
            if apply_mask:
                s = jnp.where(causal, s, -1e30)

            m_prev = m_ref[h]                                 # (tq, 1)
            m_new = jnp.maximum(m_prev, jnp.max(s, axis=-1, keepdims=True))
            alpha = jnp.exp(m_prev - m_new)
            p = jnp.exp(s - m_new)                            # (tq, tk) f32
            l_ref[h] = alpha * l_ref[h] + jnp.sum(p, axis=-1, keepdims=True)
            acc_ref[h] = alpha * acc_ref[h] + jnp.dot(
                p.astype(vh.dtype), vh, preferred_element_type=jnp.float32)
            m_ref[h] = m_new

    @pl.when(ki < qi)          # strictly below the diagonal: no mask needed
    def _off_diag():
        _update(apply_mask=False)

    @pl.when(ki == qi)         # diagonal block: mask, then normalize + store
    def _diag_and_finalize():
        _update(apply_mask=True)
        for h in range(n_head):
            l_h = jnp.maximum(l_ref[h], 1e-30)        # guard future padding masks
            inv_l = pl.reciprocal(l_h, approx=True)   # EUP slot
            inv_l = inv_l * (2.0 - l_h * inv_l)       # one Newton step -> f32-exact
            o_ref[:, h * D:(h + 1) * D] = (acc_ref[h] * inv_l).astype(o_ref.dtype)


def pallas_flash_attention(qkv, n_head, *, t_tile=128):
    """qkv: (B, T, 3*C) fused projection -> (B, T, C) causal attention output.

    q/k/v are addressed as lane blocks 0/C/2C of the last axis (no HBM split or
    transpose). Requires C % 128 == 0 for the lane-block addressing.
    """
    B, T, threeC = qkv.shape
    C = threeC // 3
    # TODO(synk): support C not a multiple of 128 (needs a (3, B, T, C) layout).
    assert C % 128 == 0, "fused q/k/v lane-block addressing needs C % 128 == 0"
    D = C // n_head
    scale = 1.0 / math.sqrt(D)

    bt = _pick_tile(T, t_tile, 8)   # shared q/kv tile keeps the causal block skip exact
    n_t = T // bt

    # Triangular step -> (qi, ki) maps, scalar-prefetched into SMEM and consumed by
    # every index_map: no grid steps above the causal diagonal at all.
    qi_list, ki_list = [], []
    for q_blk in range(n_t):
        for k_blk in range(q_blk + 1):
            qi_list.append(q_blk)
            ki_list.append(k_blk)
    qi_map = jnp.asarray(qi_list, dtype=jnp.int32)
    ki_map = jnp.asarray(ki_list, dtype=jnp.int32)
    n_steps = len(qi_list)

    q_spec = pl.BlockSpec((None, bt, C), lambda b, s, qi_m, ki_m: (b, qi_m[s], 0))
    k_spec = pl.BlockSpec((None, bt, C), lambda b, s, qi_m, ki_m: (b, ki_m[s], 1))
    v_spec = pl.BlockSpec((None, bt, C), lambda b, s, qi_m, ki_m: (b, ki_m[s], 2))
    o_spec = pl.BlockSpec((None, bt, C), lambda b, s, qi_m, ki_m: (b, qi_m[s], 0))

    itemsize = qkv.dtype.itemsize
    block = bt * C * itemsize
    # q/k/v/out double-buffered + f32 acc/m/l scratch (m/l lane-pad 1 -> 128 lanes).
    scratch = n_head * bt * (_pad(D, 128) + 2 * 128) * 4
    vmem_limit = int(max(2 * (2 * 4 * block + scratch), 32 << 20))

    kernel = functools.partial(_flash_attn_kernel, n_head=n_head, scale=scale)

    return pl.pallas_call(
        kernel,
        out_shape=jax.ShapeDtypeStruct((B, T, C), qkv.dtype),
        grid_spec=pltpu.PrefetchScalarGridSpec(
            num_scalar_prefetch=2,
            grid=(B, n_steps),
            in_specs=[q_spec, k_spec, v_spec],
            out_specs=o_spec,
            scratch_shapes=[
                pltpu.VMEM((n_head, bt, 1), jnp.float32),   # running max m
                pltpu.VMEM((n_head, bt, 1), jnp.float32),   # running sum l
                pltpu.VMEM((n_head, bt, D), jnp.float32),   # output accumulator
            ],
        ),
        # B is the only megacore-parallel axis (fine for B >= 2; for B == 1 decode
        # promote the q-tile axis to a leading parallel grid axis instead).
        compiler_params=pltpu.CompilerParams(
            dimension_semantics=("parallel", "arbitrary"),
            vmem_limit_bytes=vmem_limit),
    )(qi_map, ki_map, qkv, qkv, qkv)


# ------------------------------ forward pass -------------------------------- #

def causal_self_attention(x, params, n_head):
    """Matches CausalSelfAttention.forward.

    params:
      w_attn: (C, 3C) == c_attn.weight.T  (q | k | v column blocks)
      b_attn: (3C,)   == c_attn.bias
      w_proj: (C, C)  == c_proj.weight.T
      b_proj: (C,)    == c_proj.bias
    """
    B, T, C = x.shape

    # Fused qkv projection: ONE matmul over x -> (B, T, 3C).
    qkv = linear(x.reshape(B * T, C), params["w_attn"], params["b_attn"])
    qkv = qkv.reshape(B, T, 3 * C)

    # Flash causal attention straight out of the fused (B, T, 3C) buffer; heads are
    # merged on the way out (no HBM transposes / splits).
    y = pallas_flash_attention(qkv, n_head)

    # Output projection.
    y = linear(y.reshape(B * T, C), params["w_proj"], params["b_proj"])
    return y.reshape(B, T, C)


# --------------------------------- reference -------------------------------- #

def reference(x, params, n_head):
    B, T, C = x.shape
    D = C // n_head
    qkv = x @ params["w_attn"] + params["b_attn"]
    q, k, v = jnp.split(qkv, 3, axis=-1)

    def heads(t):
        return t.reshape(B, T, n_head, D).transpose(0, 2, 1, 3)

    q, k, v = heads(q), heads(k), heads(v)
    s = jnp.einsum("bhqd,bhkd->bhqk", q, k) / math.sqrt(D)
    mask = jnp.tril(jnp.ones((T, T), dtype=bool))
    s = jnp.where(mask[None, None], s, -jnp.inf)
    p = jax.nn.softmax(s, axis=-1)
    y = jnp.einsum("bhqk,bhkd->bhqd", p, v)
    y = y.transpose(0, 2, 1, 3).reshape(B, T, C)
    return y @ params["w_proj"] + params["b_proj"]


# ----------------------------------- main ----------------------------------- #

if __name__ == "__main__":
    # small config: block_size=T=8, n_embd=C=128, n_head=4, batch B=2
    B, T, C, n_head = 2, 8, 128, 4

    key = jax.random.PRNGKey(0)
    k_x, k_wa, k_ba, k_wp, k_bp = jax.random.split(key, 5)

    x = jax.random.normal(k_x, (B, T, C), dtype=jnp.float32)
    params = {
        # c_attn weight stored transposed as (C, 3C): columns are [q | k | v].
        "w_attn": jax.random.normal(k_wa, (C, 3 * C), dtype=jnp.float32) * 0.02,
        "b_attn": jax.random.normal(k_ba, (3 * C,), dtype=jnp.float32) * 0.02,
        "w_proj": jax.random.normal(k_wp, (C, C), dtype=jnp.float32) * 0.02,
        "b_proj": jax.random.normal(k_bp, (C,), dtype=jnp.float32) * 0.02,
    }

    y = causal_self_attention(x, params, n_head)
    jax.block_until_ready(y)

    y_ref = reference(x, params, n_head)
    assert y.shape == (B, T, C)
    max_err = jnp.max(jnp.abs(y - y_ref))
    assert jnp.allclose(y, y_ref, atol=1e-5, rtol=1e-5), \
        f"mismatch vs reference (max abs err {max_err})"

    print("KERNEL_OK")
</pallas_src>

<mosaic_0001>
module attributes {stable_mosaic.version = 11 : i64} {
  func.func @_linear_kernel(%arg0: i32, %arg1: i32, %arg2: i32, %arg3: memref<16x128xf32, #tpu.memory_space<vmem>>, %arg4: memref<128x384xf32, #tpu.memory_space<vmem>>, %arg5: memref<1x384xf32, #tpu.memory_space<vmem>>, %arg6: memref<16x384xf32, #tpu.memory_space<vmem>>, %arg7: memref<16x384xf32, #tpu.memory_space<vmem>>) attributes {dimension_semantics = [#tpu.dimension_semantics<parallel>, #tpu.dimension_semantics<parallel>, #tpu.dimension_semantics<arbitrary>], iteration_bounds = array<i64: 1, 1, 1>, scalar_prefetch = 0 : i64, scratch_operands = 1 : i64, tpu.core_type = #tpu.core_type<tc>, window_params = [{transform_indices = @transform_0, window_bounds = array<i64: 16, 128>}, {transform_indices = @transform_1, window_bounds = array<i64: 128, 384>}, {transform_indices = @transform_2, window_bounds = array<i64: 1, 384>}, {transform_indices = @transform_3, window_bounds = array<i64: 16, 384>}]} {
    %c0_i32 = arith.constant 0 : i32
    %0 = arith.cmpi eq, %arg2, %c0_i32 : i32
    %1 = arith.extui %0 : i1 to i32
    %c0_i32_0 = arith.constant 0 : i32
    %2 = arith.cmpi ne, %1, %c0_i32_0 : i32
    scf.if %2 {
      %cst_10 = arith.constant 0.000000e+00 : f32
      %12 = vector.broadcast %cst_10 : f32 to vector<16x384xf32>
      %c0_11 = arith.constant 0 : index
      %c0_12 = arith.constant 0 : index
      %13 = vector.load %arg7[%c0_11, %c0_12] : memref<16x384xf32, #tpu.memory_space<vmem>>, vector<16x384xf32>
      tpu.vector_store %arg7[%c0_11, %c0_12], %12 {strides = array<i32>} : memref<16x384xf32, #tpu.memory_space<vmem>>, vector<16x384xf32>,
    } else {
    }
    %c0 = arith.constant 0 : index
    %c0_1 = arith.constant 0 : index
    %3 = vector.load %arg7[%c0, %c0_1] : memref<16x384xf32, #tpu.memory_space<vmem>>, vector<16x384xf32>
    %c0_2 = arith.constant 0 : index
    %c0_3 = arith.constant 0 : index
    %4 = vector.load %arg3[%c0_2, %c0_3] : memref<16x128xf32, #tpu.memory_space<vmem>>, vector<16x128xf32>
    %c0_4 = arith.constant 0 : index
    %c0_5 = arith.constant 0 : index
    %5 = vector.load %arg4[%c0_4, %c0_5] : memref<128x384xf32, #tpu.memory_space<vmem>>, vector<128x384xf32>
    %cst = arith.constant dense<0.000000e+00> : vector<16x384xf32>
    %6 = tpu.matmul %4, %5, %cst {dimension_numbers = #tpu.dot_dimension_numbers<[1], [0], [0], [1], [0, 0, 1, 1], [], []>} : vector<16x128xf32>, vector<128x384xf32>, vector<16x384xf32> -> vector<16x384xf32>
    %7 = arith.addf %3, %6 : vector<16x384xf32>
    %c0_6 = arith.constant 0 : index
    %c0_7 = arith.constant 0 : index
    %8 = vector.load %arg7[%c0_6, %c0_7] : memref<16x384xf32, #tpu.memory_space<vmem>>, vector<16x384xf32>
    tpu.vector_store %arg7[%c0_6, %c0_7], %7 {strides = array<i32>} : memref<16x384xf32, #tpu.memory_space<vmem>>, vector<16x384xf32>,
    %c0_i32_8 = arith.constant 0 : i32
    %9 = arith.cmpi eq, %arg2, %c0_i32_8 : i32
    %10 = arith.extui %9 : i1 to i32
    %c0_i32_9 = arith.constant 0 : i32
    %11 = arith.cmpi ne, %10, %c0_i32_9 : i32
    scf.if %11 {
      %c0_10 = arith.constant 0 : index
      %c0_11 = arith.constant 0 : index
      %12 = vector.load %arg7[%c0_10, %c0_11] : memref<16x384xf32, #tpu.memory_space<vmem>>, vector<16x384xf32>
      %c0_12 = arith.constant 0 : index
      %c0_13 = arith.constant 0 : index
      %13 = vector.load %arg5[%c0_12, %c0_13] : memref<1x384xf32, #tpu.memory_space<vmem>>, vector<1x384xf32>
      %14 = vector.broadcast %13 : vector<1x384xf32> to vector<16x384xf32>
      %15 = arith.addf %12, %14 : vector<16x384xf32>
      %c0_14 = arith.constant 0 : index
      %c0_15 = arith.constant 0 : index
      %16 = vector.load %arg6[%c0_14, %c0_15] : memref<16x384xf32, #tpu.memory_space<vmem>>, vector<16x384xf32>
      tpu.vector_store %arg6[%c0_14, %c0_15], %15 {strides = array<i32>} : memref<16x384xf32, #tpu.memory_space<vmem>>, vector<16x384xf32>,
    } else {
    }
    return
  }
  func.func @transform_0(%arg0: i32, %arg1: i32, %arg2: i32) -> (i32, i32) {
    %c0_i32 = arith.constant 0 : i32
    return %arg0, %arg2 : i32, i32
  }
  func.func @transform_1(%arg0: i32, %arg1: i32, %arg2: i32) -> (i32, i32) {
    %c0_i32 = arith.constant 0 : i32
    return %arg2, %arg1 : i32, i32
  }
  func.func @transform_2(%arg0: i32, %arg1: i32, %arg2: i32) -> (i32, i32) {
    %c0_i32 = arith.constant 0 : i32
    %c0_i32_0 = arith.constant 0 : i32
    return %c0_i32, %arg1 : i32, i32
  }
  func.func @transform_3(%arg0: i32, %arg1: i32, %arg2: i32) -> (i32, i32) {
    %c0_i32 = arith.constant 0 : i32
    return %arg0, %arg1 : i32, i32
  }
}

</mosaic_0001>

<bundles_post_ra>
// kernel: tpu_custom_call.1
= control target key start
LH: loop header
LB: loop body
LE: loop exit
PB: predicated region body
PF: predicated region fallthrough
CT: control target
= control target key end

     0   :  { %8 = vsyncpa [#allocation4], 0  ;;  %s428_s0 = inlined_call_operand.hbm [shape: f32[16,128], index: 0, kind: input, shape index: {}]   ;;  %s429_s1 = inlined_call_operand.hbm [shape: f32[128,384], index: 1, kind: input, shape index: {}]   ;;  %s430_s2 = inlined_call_operand.hbm [shape: f32[1,384], index: 2, kind: input, shape index: {}]   ;;  %s431_s3 = inlined_call_operand.hbm [shape: f32[16,384], index: 3, kind: output, shape index: {}]  }
   0x1   :  { %9 = vsyncpa [#allocation7], 0  ;;  %s28_s14 = sshll.u32 %s429_s1, 4  ;;  %s29_s14 = int_to_ptr.hbm [resolvable:$true] %s28_s14 }
   0x2   :  { %10 = vsyncpa [#allocation5], 0  ;;  %s382_s15 = smov [#allocation6]   ;;  %s15_s19 = sshll.u32 %s428_s0, 4  ;;  %s16_s19 = int_to_ptr.hbm [resolvable:$true] %s15_s19 }
   0x3   :  { %s30_s16 = sshll.u32 %s382_s15, 4  ;;  %s383_s20 = smov 384   ;;  %s31_s16 = int_to_ptr.vmem [resolvable:$true] %s30_s16 }
   0x4   :  { %s384_s21 = smov 24   ;;  %s385_s22 = smov [#allocation3]  }
   0x5   :  { %36 = dma.hbm_to_vmem [thread:$0]  %s29_s14, 6144, %s31_s16, [#allocation7], %s383_s20, %s383_s20, %s384_s21  }
   0x6   :  { %s17_s23 = sshll.u32 %s385_s22, 4  ;;  %s386_s1 = smov 128   ;;  %s18_s23 = int_to_ptr.vmem [resolvable:$true] %s17_s23 }
   0x7   :  { %s387_s24 = smov 8   ;;  %s42_s27 = sshll.u32 %s430_s2, 4  ;;  %s43_s27 = int_to_ptr.hbm [resolvable:$true] %s42_s27 }
   0x8   :  { %23 = dma.hbm_to_vmem [thread:$0]  %s16_s19, 256, %s18_s23, [#allocation4], %s386_s1, %s386_s1, %s387_s24  }
   0x9   :  { %s388_s28 = smov [#allocation8]  }
   0xa   :  { %s44_s0 = sshll.u32 %s388_s28, 4  ;;  %s45_s0 = int_to_ptr.vmem [resolvable:$true] %s44_s0 }
   0xb   :  { %47 = dma.hbm_to_vmem [thread:$0]  %s43_s27, 48, %s45_s0, [#allocation7]  }
   0xc   :  { %376 = dma.done.wait [#allocation4], 256  }
   0xd   :  { %377 = vsyncadd [#allocation4], 4294967040 }
   0xe   :  { %378 = dma.done.wait [#allocation7], 6192  }
   0xf   :  { %379 = vsyncadd [#allocation7], 4294961104  ;;  %v125_v0 = vld [vmem:[#allocation6 + $0x178] sm:$0xff]  ;;  %v122_v1 = vld [vmem:[#allocation6 + $0x160] sm:$0xff]  ;;  %s389_s2 = smov [#allocation9]   ;;  %s242_s5 = sshll.u32 %s431_s3, 4  ;;  %s243_s5 = int_to_ptr.hbm [resolvable:$true] %s242_s5 }
  0x10   :  { %172 = vmatpush.msra.mxu2 %v125_v0  ;;  %v124_v2 = vld [vmem:[#allocation6 + $0x170] sm:$0xff]  ;;  %v123_v3 = vld [vmem:[#allocation6 + $0x168] sm:$0xff]  ;;  %v121_v5 = vld [vmem:[#allocation6 + $0x158] sm:$0xff]  ;;  %s240_s29 = sshll.u32 %s389_s2, 4  ;;  %s241_s29 = int_to_ptr.vmem [resolvable:$true] %s240_s29 }
  0x11   :  { %v119_v4 = vld [vmem:[#allocation6 + $0x148] sm:$0xff]  ;;  %149 = vmatpush.msra.mxu1 %v124_v2  ;;  %256 = vmatpush.msra.mxu3 %v123_v3  ;;  %v120_v6 = vld [vmem:[#allocation6 + $0x150] sm:$0xff]  ;;  %v118_v7 = vld [vmem:[#allocation6 + $0x140] sm:$0xff] }
  0x12   :  { %173 = vmatpush.msra.mxu2 %v122_v1  ;;  %v117_v8 = vld [vmem:[#allocation6 + $0x138] sm:$0xff]  ;;  %126 = vmatpush.msra.mxu0 %v123_v3  ;;  %v116_v9 = vld [vmem:[#allocation6 + $0x130] sm:$0xff]  ;;  %v115_v10 = vld [vmem:[#allocation6 + $0x128] sm:$0xff] }
  0x13   :  { %150 = vmatpush.msra.mxu1 %v121_v5  ;;  %257 = vmatpush.msra.mxu3 %v120_v6  ;;  %v114_v11 = vld [vmem:[#allocation6 + $0x120] sm:$0xff]  ;;  %v113_v12 = vld [vmem:[#allocation6 + $0x118] sm:$0xff]  ;;  %v112_v13 = vld [vmem:[#allocation6 + $0x110] sm:$0xff] }
  0x14   :  { %174 = vmatpush.msra.mxu2 %v119_v4  ;;  %127 = vmatpush.msra.mxu0 %v120_v6  ;;  %v111_v14 = vld [vmem:[#allocation6 + $0x108] sm:$0xff]  ;;  %v110_v15 = vld [vmem:[#allocation6 + $0x100] sm:$0xff]  ;;  %v109_v16 = vld [vmem:[#allocation6 + $0xf8] sm:$0xff] }
  0x15   :  { %151 = vmatpush.msra.mxu1 %v118_v7  ;;  %258 = vmatpush.msra.mxu3 %v117_v8  ;;  %v108_v17 = vld [vmem:[#allocation6 + $0xf0] sm:$0xff]  ;;  %v107_v18 = vld [vmem:[#allocation6 + $0xe8] sm:$0xff]  ;;  %v106_v19 = vld [vmem:[#allocation6 + $0xe0] sm:$0xff] }
  0x16   :  { %175 = vmatpush.msra.mxu2 %v116_v9  ;;  %128 = vmatpush.msra.mxu0 %v117_v8  ;;  %v105_v20 = vld [vmem:[#allocation6 + $0xd8] sm:$0xff]  ;;  %v104_v21 = vld [vmem:[#allocation6 + $0xd0] sm:$0xff]  ;;  %v103_v22 = vld [vmem:[#allocation6 + $0xc8] sm:$0xff] }
  0x17   :  { %152 = vmatpush.msra.mxu1 %v115_v10  ;;  %259 = vmatpush.msra.mxu3 %v114_v11  ;;  %v102_v23 = vld [vmem:[#allocation6 + $0xc0] sm:$0xff]  ;;  %v101_v24 = vld [vmem:[#allocation6 + $0xb8] sm:$0xff]  ;;  %v100_v25 = vld [vmem:[#allocation6 + $0xb0] sm:$0xff] }
  0x18   :  { %176 = vmatpush.msra.mxu2 %v113_v12  ;;  %129 = vmatpush.msra.mxu0 %v114_v11  ;;  %v99_v26 = vld [vmem:[#allocation6 + $0xa8] sm:$0xff]  ;;  %v98_v27 = vld [vmem:[#allocation6 + $0xa0] sm:$0xff]  ;;  %v97_v28 = vld [vmem:[#allocation6 + $0x98] sm:$0xff] }
  0x19   :  { %153 = vmatpush.msra.mxu1 %v112_v13  ;;  %260 = vmatpush.msra.mxu3 %v111_v14  ;;  %v96_v29 = vld [vmem:[#allocation6 + $0x90] sm:$0xff]  ;;  %v95_v30 = vld [vmem:[#allocation6 + $0x88] sm:$0xff]  ;;  %v94_v31 = vld [vmem:[#allocation6 + $0x80] sm:$0xff] }
  0x1a   :  { %177 = vmatpush.msra.mxu2 %v110_v15  ;;  %130 = vmatpush.msra.mxu0 %v111_v14  ;;  %v93_v32 = vld [vmem:[#allocation6 + $0x78] sm:$0xff]  ;;  %v92_v33 = vld [vmem:[#allocation6 + $0x70] sm:$0xff]  ;;  %v91_v34 = vld [vmem:[#allocation6 + $0x68] sm:$0xff] }
  0x1b   :  { %154 = vmatpush.msra.mxu1 %v109_v16  ;;  %261 = vmatpush.msra.mxu3 %v108_v17  ;;  %v90_v35 = vld [vmem:[#allocation6 + $0x60] sm:$0xff]  ;;  %v89_v36 = vld [vmem:[#allocation6 + $0x58] sm:$0xff]  ;;  %v88_v37 = vld [vmem:[#allocation6 + $0x50] sm:$0xff] }
  0x1c   :  { %178 = vmatpush.msra.mxu2 %v107_v18  ;;  %131 = vmatpush.msra.mxu0 %v108_v17  ;;  %v87_v38 = vld [vmem:[#allocation6 + $0x48] sm:$0xff]  ;;  %v86_v39 = vld [vmem:[#allocation6 + $0x40] sm:$0xff]  ;;  %v85_v40 = vld [vmem:[#allocation6 + $0x38] sm:$0xff] }
  0x1d   :  { %155 = vmatpush.msra.mxu1 %v106_v19  ;;  %262 = vmatpush.msra.mxu3 %v105_v20  ;;  %v84_v41 = vld [vmem:[#allocation6 + $0x30] sm:$0xff]  ;;  %v83_v42 = vld [vmem:[#allocation6 + $0x28] sm:$0xff]  ;;  %v82_v43 = vld [vmem:[#allocation6 + $0x20] sm:$0xff] }
  0x1e   :  { %179 = vmatpush.msra.mxu2 %v104_v21  ;;  %132 = vmatpush.msra.mxu0 %v105_v20  ;;  %v81_v44 = vld [vmem:[#allocation6 + $0x18] sm:$0xff]  ;;  %v80_v45 = vld [vmem:[#allocation6 + $0x10] sm:$0xff]  ;;  %v79_v47 = vld [vmem:[#allocation6 + $0x8] sm:$0xff] }
  0x1f   :  { %156 = vmatpush.msra.mxu1 %v103_v22  ;;  %263 = vmatpush.msra.mxu3 %v102_v23  ;;  %v76_v46 = vld [vmem:[#allocation3] sm:$0xff]  ;;  %v78_v48 = vld [vmem:[#allocation6] sm:$0xff]  ;;  %v77_v49 = vld [vmem:[#allocation3 + $0x8] sm:$0xff] }
  0x20   :  { %180 = vmatpush.msra.mxu2 %v101_v24  ;;  %133 = vmatpush.msra.mxu0 %v102_v23  ;;  %v216_v50 = vld [vmem:[#allocation8] sm:$0x7] }
  0x21   :  { %157 = vmatpush.msra.mxu1 %v100_v25  ;;  %264 = vmatpush.msra.mxu3 %v99_v26  ;;  %v219_v51 = vperm.slane %v216_v50, 1  ;;  %v218_v52 = vperm.slane %v216_v50, 0  ;;  %v220_v55 = vperm.slane %v216_v50, 2 }
  0x22   :  { %181 = vmatpush.msra.mxu2 %v98_v27  ;;  %134 = vmatpush.msra.mxu0 %v99_v26 }
  0x23   :  { %158 = vmatpush.msra.mxu1 %v97_v28  ;;  %265 = vmatpush.msra.mxu3 %v96_v29 }
  0x24   :  { %182 = vmatpush.msra.mxu2 %v95_v30  ;;  %135 = vmatpush.msra.mxu0 %v96_v29 }
  0x25   :  { %159 = vmatpush.msra.mxu1 %v94_v31  ;;  %266 = vmatpush.msra.mxu3 %v93_v32 }
  0x26   :  { %183 = vmatpush.msra.mxu2 %v92_v33  ;;  %136 = vmatpush.msra.mxu0 %v93_v32 }
  0x27   :  { %160 = vmatpush.msra.mxu1 %v91_v34  ;;  %267 = vmatpush.msra.mxu3 %v90_v35 }
  0x28   :  { %184 = vmatpush.msra.mxu2 %v89_v36  ;;  %137 = vmatpush.msra.mxu0 %v90_v35 }
  0x29   :  { %161 = vmatpush.msra.mxu1 %v88_v37  ;;  %268 = vmatpush.msra.mxu3 %v87_v38 }
  0x2a   :  { %185 = vmatpush.msra.mxu2 %v86_v39  ;;  %138 = vmatpush.msra.mxu0 %v87_v38 }
  0x2b   :  { %162 = vmatpush.msra.mxu1 %v85_v40  ;;  %269 = vmatpush.msra.mxu3 %v84_v41 }
  0x2c   :  { %186 = vmatpush.msra.mxu2 %v83_v42  ;;  %139 = vmatpush.msra.mxu0 %v84_v41 }
  0x2d   :  { %163 = vmatpush.msra.mxu1 %v82_v43  ;;  %270 = vmatpush.msra.mxu3 %v81_v44 }
  0x2e   :  { %187 = vmatpush.msra.mxu2 %v80_v45  ;;  %140 = vmatpush.msra.mxu0 %v81_v44 }
  0x2f   :  { %188 = vmatmul.f32.vlgmr.msra.gmra.mxu2 %v76_v46  ;;  %164 = vmatpush.msra.mxu1 %v79_v47 }
  0x30   :  { %165 = vmatmul.f32.vlgmr.msra.gmra.mxu1 %v76_v46  ;;  %271 = vmatpush.msra.mxu3 %v78_v48 }
  0x31   :  { %145 = vmatmul.f32.vlgmr.msra.gmra.mxu3 %v77_v49  ;;  %141 = vmatpush.msra.mxu0 %v78_v48 }
  0x32   :  { %142 = vmatmul.f32.vlgmr.msra.gmra.mxu0 %v76_v46 }
  0x37   :  { %191 = vmatmul.f32.gmra.mxu2 %v77_v49 }
  0x38   :  { %168 = vmatmul.f32.gmra.mxu1 %v77_v49 }
  0xad   :  { %v166_v53 = vpop.f32.mrf.mxu1 }
  0xae   :  { %v225_v54 = vadd.f32 %v219_v51, %v166_v53 }
  0xaf   :  { %v143_v56 = vpop.f32.mrf.mxu0 }
  0xb0   :  { %231 = vst [vmem:[#allocation9 + $0x8] sm:$0xff] %v225_v54  ;;  %v224_v57 = vadd.f32 %v218_v52, %v143_v56 }
  0xb2   :  { %v189_v58 = vpop.f32.mrf.mxu2  ;;  %230 = vst [vmem:[#allocation9] sm:$0xff] %v224_v57 }
  0xb3   :  { %v226_v59 = vadd.f32 %v220_v55, %v189_v58 }
  0xb4   :  { %v146_v60 = vpop.f32.mrf.mxu3 }
  0xb5   :  { %232 = vst [vmem:[#allocation9 + $0x10] sm:$0xff] %v226_v59  ;;  %v227_v61 = vadd.f32 %v218_v52, %v146_v60  ;;  %v169_v62 = vpop.f32.mrf.mxu1 }
  0xb6   :  { %v228_v63 = vadd.f32 %v219_v51, %v169_v62 }
  0xb7   :  { %233 = vst [vmem:[#allocation9 + $0x18] sm:$0xff] %v227_v61 }
  0xb8   :  { %234 = vst [vmem:[#allocation9 + $0x20] sm:$0xff] %v228_v63 }
  0xba   :  { %v192_v0 = vpop.f32.mrf.mxu2 }
  0xbb   :  { %v229_v1 = vadd.f32 %v220_v55, %v192_v0 }
  0xbd   :  { %235 = vst [vmem:[#allocation9 + $0x28] sm:$0xff] %v229_v1 }
  0xbe   :  { %248 = dma.vmem_to_hbm [thread:$0]  %s241_s29, 768, %s243_s5, [#allocation5], %s383_s20, %s383_s20, %s384_s21  }
  0xbf   :  { %380 = dma.done.wait [#allocation5], 768  }
  0xc0   :  { %381 = vsyncadd [#allocation5], 4294966528 }
  0xc1   :  { %253 = vsyncpa [#allocation4], 1 }
  0xc2   :  { %254 = vsyncpa [#allocation7], 1 }
  0xc3   :  { %255 = vsyncpa [#allocation5], 1 }

</bundles_post_ra>
